<compile_context>
chip_gen: v5e
topology: v5e:2x2
jax: 0.10.0
libtpu: 0.0.40
codegen_flags: <defaults>
</compile_context>

<pallas_src>
import functools

import jax
import jax.numpy as jnp
from jax.experimental import pallas as pl
from jax.experimental.pallas import tpu as pltpu


def block_kernel(x_ref, ln1_w_ref, ln1_b_ref,
                 wqkv_ref, wp_ref, bp_ref,
                 ln2_w_ref, ln2_b_ref,
                 w1_ref, b1_ref, w2_ref, b2_ref,
                 o_ref,
                 qkv_sc, mh_sc,
                 *, num_heads, head_size, group_heads, b_tile, seq_len):
    eps = 1e-5
    d = num_heads * head_size
    rows = b_tile * seq_len

    x = x_ref[...].reshape(rows, d)                        # (R, D) f32

    # ---------------- LayerNorm 1 (f32 statistics) ----------------
    mu = jnp.mean(x, axis=-1, keepdims=True)
    var = jnp.mean((x - mu) ** 2, axis=-1, keepdims=True)
    xn = (x - mu) * jax.lax.rsqrt(var + eps) * ln1_w_ref[0] + ln1_b_ref[0]

    # ------- Fused QKV projection: one full-width bf16 MXU matmul, cast to bf16 ONCE -------
    qkv_sc[...] = jnp.dot(xn.astype(jnp.bfloat16), wqkv_ref[...],
                          preferred_element_type=jnp.float32).astype(jnp.bfloat16)

    # ---------------- Per-head attention, processed in lane-aligned head groups ----------------
    # TODO(synk): optional attention mask path not implemented (forward default mask=None).
    # TODO(synk): for large num_heads / T, switch the group loop to lax.fori_loop and add
    #             flash-style KV tiling instead of full (T,T) scores per head.
    gw = group_heads * head_size
    num_groups = num_heads // group_heads
    for g in range(num_groups):                            # static unroll (small H)
        glo = g * gw
        qg = qkv_sc[:, glo:glo + gw].reshape(b_tile, seq_len, gw)          # bf16, no cast
        kg = qkv_sc[:, d + glo:d + glo + gw].reshape(b_tile, seq_len, gw)
        vg = qkv_sc[:, 2 * d + glo:2 * d + glo + gw].reshape(b_tile, seq_len, gw)
        outs = []
        for h in range(group_heads):
            lo, hi = h * head_size, (h + 1) * head_size
            # 1/sqrt(head_size) already folded into the Q weight columns at pack time.
            wei = jnp.einsum('btd,bsd->bts', qg[:, :, lo:hi], kg[:, :, lo:hi],
                             preferred_element_type=jnp.float32)
            m = jnp.max(wei, axis=-1, keepdims=True)
            p = jnp.exp(wei - m)
            denom = jnp.sum(p, axis=-1, keepdims=True)
            p = p * pl.reciprocal(denom)                   # exact reciprocal (tiny op)
            out_h = jnp.einsum('bts,bsd->btd', p.astype(jnp.bfloat16), vg[:, :, lo:hi],
                               preferred_element_type=jnp.float32)
            outs.append(out_h.astype(jnp.bfloat16))
        out_g = outs[0] if group_heads == 1 else jnp.concatenate(outs, axis=-1)
        mh_sc[:, glo:glo + gw] = out_g.reshape(rows, gw)   # one lane-dense store per group

    # ---------------- Output projection + residual 1 ----------------
    attn = jnp.dot(mh_sc[...], wp_ref[...], preferred_element_type=jnp.float32) + bp_ref[0]
    x1 = x + attn                                          # f32 residual

    # ---------------- LayerNorm 2 ----------------
    mu2 = jnp.mean(x1, axis=-1, keepdims=True)
    var2 = jnp.mean((x1 - mu2) ** 2, axis=-1, keepdims=True)
    xn2 = (x1 - mu2) * jax.lax.rsqrt(var2 + eps) * ln2_w_ref[0] + ln2_b_ref[0]

    # ---------------- FeedForward (4x expand, ReLU, project) ----------------
    # TODO(synk): tile the 4D hidden axis (emit_pipeline over w1 columns / w2 rows) for large D
    #             so the bf16 FFN weights fit v7x's 64 MiB VMEM.
    h1 = jnp.dot(xn2.astype(jnp.bfloat16), w1_ref[...],
                 preferred_element_type=jnp.float32) + b1_ref[0]
    h1 = jnp.maximum(h1, 0.0)
    ffn = jnp.dot(h1.astype(jnp.bfloat16), w2_ref[...],
                  preferred_element_type=jnp.float32) + b2_ref[0]

    # Dropout layers are identity in inference mode.
    o_ref[...] = (x1 + ffn).reshape(b_tile, seq_len, d)    # residual 2


def _choose_group_heads(num_heads, head_size):
    # Largest divisor of num_heads whose packed width <= 128 lanes (lane-dense group stores).
    if head_size >= 128:
        return 1
    g = 1
    for cand in range(1, num_heads + 1):
        if num_heads % cand == 0 and cand * head_size <= 128:
            g = cand
    return g


def choose_b_tile(B, T, target_rows=512):
    # Fill the MXU M-dim (rows = b_tile*T up to ~512) but always keep >= 2 grid steps so the
    # "parallel" batch axis can shard across v7x's two TensorCores.
    min_steps = 2 if B >= 2 else 1
    best = 1
    for cand in range(1, B + 1):
        if B % cand:
            continue
        if (B // cand) < min_steps:
            continue
        if cand * T <= target_rows:
            best = cand
    return best


def _vmem_capacity_bytes():
    # Per-generation VMEM: 128 MiB on v5e/v6e, 64 MiB on v7x. Narrow fallback only affects
    # the vmem_limit heuristic, never swallows kernel errors.
    try:
        return int(pltpu.get_tpu_info().vmem_capacity_bytes)
    except Exception:
        return 64 << 20


def pack_params(params, num_heads):
    # One-time weight packing (hoisted out of the forward path): per-head (H, D, hs) Q/K/V
    # weights -> one dense (D, 3D) bf16 weight, with the 1/sqrt(hs) attention scale folded
    # into the Q columns. Heavy matmul weights shipped as bf16 to halve DMA bytes.
    (ln1_w, ln1_b, wq, wk, wv, wp, bp, ln2_w, ln2_b, w1, b1, w2, b2) = params
    D = wp.shape[0]
    head_size = D // num_heads
    scale = float(head_size) ** -0.5
    wq_full = jnp.transpose(wq, (1, 0, 2)).reshape(D, D) * scale
    wk_full = jnp.transpose(wk, (1, 0, 2)).reshape(D, D)
    wv_full = jnp.transpose(wv, (1, 0, 2)).reshape(D, D)
    w_qkv = jnp.concatenate([wq_full, wk_full, wv_full], axis=1).astype(jnp.bfloat16)
    return (ln1_w, ln1_b,
            w_qkv, wp.astype(jnp.bfloat16), bp,
            ln2_w, ln2_b,
            w1.astype(jnp.bfloat16), b1,
            w2.astype(jnp.bfloat16), b2)


def block_forward(x, packed, num_heads, b_tile):
    (ln1_w, ln1_b, w_qkv, wp_bf, bp, ln2_w, ln2_b, w1_bf, b1, w2_bf, b2) = packed
    B, T, D = x.shape
    assert D % num_heads == 0 and B % b_tile == 0
    head_size = D // num_heads
    group_heads = _choose_group_heads(num_heads, head_size)
    rows = b_tile * T

    kernel = functools.partial(block_kernel, num_heads=num_heads, head_size=head_size,
                               group_heads=group_heads, b_tile=b_tile, seq_len=T)

    def wspec(shape):
        # Weights/biases: constant index map -> fetched once, resident across grid steps.
        return pl.BlockSpec(shape, lambda b: (0, 0))

    in_specs = [
        pl.BlockSpec((b_tile, T, D), lambda b: (b, 0, 0)),   # x
        wspec((1, D)), wspec((1, D)),                        # ln1 w, b
        wspec((D, 3 * D)),                                   # fused W_qkv (bf16, Q pre-scaled)
        wspec((D, D)), wspec((1, D)),                        # proj w (bf16), b
        wspec((1, D)), wspec((1, D)),                        # ln2 w, b
        wspec((D, 4 * D)), wspec((1, 4 * D)),                # ffn w1 (bf16), b1
        wspec((4 * D, D)), wspec((1, D)),                    # ffn w2 (bf16), b2
    ]

    # VMEM budget: double-buffered f32 x/out blocks, bf16 weights (x2 buffers), bf16 scratches,
    # plus rough in-kernel intermediates.
    param_bytes = sum(int(p.size) * p.dtype.itemsize for p in packed)
    scratch_bytes = 2 * rows * (3 * D) + 2 * rows * D            # bf16 qkv + mh scratch
    io_bytes = 2 * (2 * 4 * rows * D)                            # x and out, double-buffered
    act_bytes = 4 * rows * 14 * D + 4 * b_tile * group_heads * T * T
    working_set = io_bytes + 2 * param_bytes + scratch_bytes + act_bytes
    vmem_cap = _vmem_capacity_bytes()
    vmem_limit = int(min(int(0.85 * vmem_cap), max(32 << 20, 2 * working_set)))

    flops = 24 * B * T * D * D + 4 * B * T * T * D
    cost = pl.CostEstimate(flops=flops,
                           transcendentals=B * num_heads * T * T + 4 * B * T,
                           bytes_accessed=2 * 4 * B * T * D + param_bytes)

    return pl.pallas_call(
        kernel,
        out_shape=jax.ShapeDtypeStruct((B, T, D), jnp.float32),
        grid=(B // b_tile,),
        in_specs=in_specs,
        out_specs=pl.BlockSpec((b_tile, T, D), lambda b: (b, 0, 0)),
        scratch_shapes=[pltpu.VMEM((rows, 3 * D), jnp.bfloat16),   # qkv (cast once)
                        pltpu.VMEM((rows, D), jnp.bfloat16)],      # multi-head output
        compiler_params=pltpu.CompilerParams(
            dimension_semantics=("parallel",),
            vmem_limit_bytes=vmem_limit),
        cost_estimate=cost,
    )(x, ln1_w, ln1_b, w_qkv, wp_bf, bp, ln2_w, ln2_b, w1_bf, b1, w2_bf, b2)


def reference_forward(x, params, num_heads):
    (ln1_w, ln1_b, wq, wk, wv, wp, bp, ln2_w, ln2_b, w1, b1, w2, b2) = params
    D = x.shape[-1]
    hs = D // num_heads
    eps = 1e-5

    def ln(z, w, b):
        mu = jnp.mean(z, axis=-1, keepdims=True)
        var = jnp.mean((z - mu) ** 2, axis=-1, keepdims=True)
        return (z - mu) * jax.lax.rsqrt(var + eps) * w + b

    xn = ln(x, ln1_w[0], ln1_b[0])
    heads = []
    for h in range(num_heads):
        q = xn @ wq[h]
        k = xn @ wk[h]
        v = xn @ wv[h]
        wei = jax.nn.softmax((q @ jnp.swapaxes(k, -1, -2)) * hs ** -0.5, axis=-1)
        heads.append(wei @ v)
    mh = jnp.concatenate(heads, axis=-1)
    x1 = x + mh @ wp + bp[0]
    xn2 = ln(x1, ln2_w[0], ln2_b[0])
    ffn = jnp.maximum(xn2 @ w1 + b1[0], 0.0) @ w2 + b2[0]
    return x1 + ffn


def init_params(key, n_embds, num_heads):
    head_size = n_embds // num_heads
    ks = jax.random.split(key, 8)
    s = 0.02
    ln1_w = jnp.ones((1, n_embds), jnp.float32)
    ln1_b = jnp.zeros((1, n_embds), jnp.float32)
    wq = s * jax.random.normal(ks[0], (num_heads, n_embds, head_size), jnp.float32)
    wk = s * jax.random.normal(ks[1], (num_heads, n_embds, head_size), jnp.float32)
    wv = s * jax.random.normal(ks[2], (num_heads, n_embds, head_size), jnp.float32)
    wp = s * jax.random.normal(ks[3], (n_embds, n_embds), jnp.float32)
    bp = s * jax.random.normal(ks[4], (1, n_embds), jnp.float32)
    ln2_w = jnp.ones((1, n_embds), jnp.float32)
    ln2_b = jnp.zeros((1, n_embds), jnp.float32)
    w1 = s * jax.random.normal(ks[5], (n_embds, 4 * n_embds), jnp.float32)
    b1 = jnp.zeros((1, 4 * n_embds), jnp.float32)
    w2 = s * jax.random.normal(ks[6], (4 * n_embds, n_embds), jnp.float32)
    b2 = jnp.zeros((1, n_embds), jnp.float32)
    return (ln1_w, ln1_b, wq, wk, wv, wp, bp, ln2_w, ln2_b, w1, b1, w2, b2)


if __name__ == "__main__":
    B, T, n_embds, num_heads = 2, 8, 32, 4
    key = jax.random.PRNGKey(0)
    kx, kp = jax.random.split(key)
    x = jax.random.normal(kx, (B, T, n_embds), jnp.float32)
    params = init_params(kp, n_embds, num_heads)

    # One-time weight packing (not re-run per forward); the forward itself is jitted once.
    packed = pack_params(params, num_heads)
    b_tile = choose_b_tile(B, T)
    fwd = jax.jit(lambda xx, pp: block_forward(xx, pp, num_heads, b_tile))

    out = jax.block_until_ready(fwd(x, packed))

    ref = reference_forward(x, params, num_heads)
    assert out.shape == (B, T, n_embds)
    # bf16 matmul inputs (f32 accumulation) -> slightly looser tolerance than pure f32
    assert jnp.allclose(out, ref, atol=2e-2, rtol=2e-2), "mismatch vs pure-JAX reference"
    print("KERNEL_OK")
</pallas_src>

<mosaic_0001>
module attributes {stable_mosaic.version = 11 : i64} {
  func.func @block_kernel(%arg0: i32, %arg1: memref<1x8x32xf32, #tpu.memory_space<vmem>>, %arg2: memref<1x32xf32, #tpu.memory_space<vmem>>, %arg3: memref<1x32xf32, #tpu.memory_space<vmem>>, %arg4: memref<32x96xbf16, #tpu.memory_space<vmem>>, %arg5: memref<32x32xbf16, #tpu.memory_space<vmem>>, %arg6: memref<1x32xf32, #tpu.memory_space<vmem>>, %arg7: memref<1x32xf32, #tpu.memory_space<vmem>>, %arg8: memref<1x32xf32, #tpu.memory_space<vmem>>, %arg9: memref<32x128xbf16, #tpu.memory_space<vmem>>, %arg10: memref<1x128xf32, #tpu.memory_space<vmem>>, %arg11: memref<128x32xbf16, #tpu.memory_space<vmem>>, %arg12: memref<1x32xf32, #tpu.memory_space<vmem>>, %arg13: memref<1x8x32xf32, #tpu.memory_space<vmem>>, %arg14: memref<8x96xbf16, #tpu.memory_space<vmem>>, %arg15: memref<8x32xbf16, #tpu.memory_space<vmem>>) attributes {dimension_semantics = [#tpu.dimension_semantics<parallel>], iteration_bounds = array<i64: 2>, scalar_prefetch = 0 : i64, scratch_operands = 2 : i64, tpu.core_type = #tpu.core_type<tc>, window_params = [{transform_indices = @transform_0, window_bounds = array<i64: 1, 8, 32>}, {pipeline_mode = #tpu.pipeline_mode<synchronous>, transform_indices = @transform_1, window_bounds = array<i64: 1, 32>}, {pipeline_mode = #tpu.pipeline_mode<synchronous>, transform_indices = @transform_2, window_bounds = array<i64: 1, 32>}, {pipeline_mode = #tpu.pipeline_mode<synchronous>, transform_indices = @transform_3, window_bounds = array<i64: 32, 96>}, {pipeline_mode = #tpu.pipeline_mode<synchronous>, transform_indices = @transform_4, window_bounds = array<i64: 32, 32>}, {pipeline_mode = #tpu.pipeline_mode<synchronous>, transform_indices = @transform_5, window_bounds = array<i64: 1, 32>}, {pipeline_mode = #tpu.pipeline_mode<synchronous>, transform_indices = @transform_6, window_bounds = array<i64: 1, 32>}, {pipeline_mode = #tpu.pipeline_mode<synchronous>, transform_indices = @transform_7, window_bounds = array<i64: 1, 32>}, {pipeline_mode = #tpu.pipeline_mode<synchronous>, transform_indices = @transform_8, window_bounds = array<i64: 32, 128>}, {pipeline_mode = #tpu.pipeline_mode<synchronous>, transform_indices = @transform_9, window_bounds = array<i64: 1, 128>}, {pipeline_mode = #tpu.pipeline_mode<synchronous>, transform_indices = @transform_10, window_bounds = array<i64: 128, 32>}, {pipeline_mode = #tpu.pipeline_mode<synchronous>, transform_indices = @transform_11, window_bounds = array<i64: 1, 32>}, {transform_indices = @transform_12, window_bounds = array<i64: 1, 8, 32>}]} {
    %c0 = arith.constant 0 : index
    %c0_0 = arith.constant 0 : index
    %c0_1 = arith.constant 0 : index
    %0 = vector.load %arg1[%c0, %c0_0, %c0_1] : memref<1x8x32xf32, #tpu.memory_space<vmem>>, vector<1x8x32xf32>
    %1 = vector.shape_cast %0 : vector<1x8x32xf32> to vector<8x32xf32>
    %cst = arith.constant dense<0.000000e+00> : vector<8xf32>
    %2 = vector.multi_reduction <add>, %1, %cst [1] : vector<8x32xf32> to vector<8xf32>
    %3 = vector.shape_cast %2 : vector<8xf32> to vector<8x1xf32>
    %cst_2 = arith.constant 3.200000e+01 : f32
    %4 = vector.broadcast %cst_2 : f32 to vector<8x1xf32>
    %5 = arith.divf %3, %4 : vector<8x1xf32>
    %6 = vector.broadcast %5 : vector<8x1xf32> to vector<8x32xf32>
    %7 = arith.subf %1, %6 : vector<8x32xf32>
    %8 = arith.mulf %7, %7 : vector<8x32xf32>
    %cst_3 = arith.constant dense<0.000000e+00> : vector<8xf32>
    %9 = vector.multi_reduction <add>, %8, %cst_3 [1] : vector<8x32xf32> to vector<8xf32>
    %10 = vector.shape_cast %9 : vector<8xf32> to vector<8x1xf32>
    %cst_4 = arith.constant 3.200000e+01 : f32
    %11 = vector.broadcast %cst_4 : f32 to vector<8x1xf32>
    %12 = arith.divf %10, %11 : vector<8x1xf32>
    %13 = vector.broadcast %5 : vector<8x1xf32> to vector<8x32xf32>
    %14 = arith.subf %1, %13 : vector<8x32xf32>
    %cst_5 = arith.constant 9.99999974E-6 : f32
    %15 = vector.broadcast %cst_5 : f32 to vector<8x1xf32>
    %16 = arith.addf %12, %15 : vector<8x1xf32>
    %17 = math.rsqrt %16 : vector<8x1xf32>
    %18 = vector.broadcast %17 : vector<8x1xf32> to vector<8x32xf32>
    %19 = arith.mulf %14, %18 : vector<8x32xf32>
    %c0_6 = arith.constant 0 : index
    %c0_7 = arith.constant 0 : index
    %20 = vector.load %arg2[%c0_6, %c0_7] : memref<1x32xf32, #tpu.memory_space<vmem>>, vector<1x32xf32>
    %21 = vector.shape_cast %20 : vector<1x32xf32> to vector<32xf32>
    %22 = vector.shape_cast %21 : vector<32xf32> to vector<1x32xf32>
    %23 = vector.broadcast %22 : vector<1x32xf32> to vector<8x32xf32>
    %24 = arith.mulf %19, %23 : vector<8x32xf32>
    %c0_8 = arith.constant 0 : index
    %c0_9 = arith.constant 0 : index
    %25 = vector.load %arg3[%c0_8, %c0_9] : memref<1x32xf32, #tpu.memory_space<vmem>>, vector<1x32xf32>
    %26 = vector.shape_cast %25 : vector<1x32xf32> to vector<32xf32>
    %27 = vector.shape_cast %26 : vector<32xf32> to vector<1x32xf32>
    %28 = vector.broadcast %27 : vector<1x32xf32> to vector<8x32xf32>
    %29 = arith.addf %24, %28 : vector<8x32xf32>
    %30 = arith.truncf %29 : vector<8x32xf32> to vector<8x32xbf16>
    %c0_10 = arith.constant 0 : index
    %c0_11 = arith.constant 0 : index
    %31 = vector.load %arg4[%c0_10, %c0_11] : memref<32x96xbf16, #tpu.memory_space<vmem>>, vector<32x96xbf16>
    %cst_12 = arith.constant dense<0.000000e+00> : vector<8x96xf32>
    %32 = tpu.matmul %30, %31, %cst_12 {dimension_numbers = #tpu.dot_dimension_numbers<[1], [0], [0], [1], [0, 0, 1, 1], [], []>} : vector<8x32xbf16>, vector<32x96xbf16>, vector<8x96xf32> -> vector<8x96xf32>
    %33 = arith.truncf %32 : vector<8x96xf32> to vector<8x96xbf16>
    %c0_13 = arith.constant 0 : index
    %c0_14 = arith.constant 0 : index
    %34 = vector.load %arg14[%c0_13, %c0_14] : memref<8x96xbf16, #tpu.memory_space<vmem>>, vector<8x96xbf16>
    tpu.vector_store %arg14[%c0_13, %c0_14], %33 {strides = array<i32>} : memref<8x96xbf16, #tpu.memory_space<vmem>>, vector<8x96xbf16>,
    %c0_15 = arith.constant 0 : index
    %c0_16 = arith.constant 0 : index
    %35 = vector.load %arg14[%c0_15, %c0_16] : memref<8x96xbf16, #tpu.memory_space<vmem>>, vector<8x32xbf16>
    %36 = vector.shape_cast %35 : vector<8x32xbf16> to vector<1x8x32xbf16>
    %c0_17 = arith.constant 0 : index
    %c32 = arith.constant 32 : index
    %37 = vector.load %arg14[%c0_17, %c32] : memref<8x96xbf16, #tpu.memory_space<vmem>>, vector<8x32xbf16>
    %38 = vector.shape_cast %37 : vector<8x32xbf16> to vector<1x8x32xbf16>
    %c0_18 = arith.constant 0 : index
    %c64 = arith.constant 64 : index
    %39 = vector.load %arg14[%c0_18, %c64] : memref<8x96xbf16, #tpu.memory_space<vmem>>, vector<8x32xbf16>
    %40 = vector.shape_cast %39 : vector<8x32xbf16> to vector<1x8x32xbf16>
    %41 = vector.extract_strided_slice %36 {offsets = [0, 0, 0], sizes = [1, 8, 8], strides = [1, 1, 1]} : vector<1x8x32xbf16> to vector<1x8x8xbf16>
    %42 = vector.extract_strided_slice %38 {offsets = [0, 0, 0], sizes = [1, 8, 8], strides = [1, 1, 1]} : vector<1x8x32xbf16> to vector<1x8x8xbf16>
    "tpu.trace_start"() <{level = 10 : i32, message = "btd,bsd->bts"}> : () -> ()
    %cst_19 = arith.constant dense<0.000000e+00> : vector<1x8x8xf32>
    %43 = tpu.matmul %41, %42, %cst_19 {dimension_numbers = #tpu.dot_dimension_numbers<[2], [2], [1], [1], [0, 0, 0, 1, 1, 1], [0], [0]>} : vector<1x8x8xbf16>, vector<1x8x8xbf16>, vector<1x8x8xf32> -> vector<1x8x8xf32>
    "tpu.trace_stop"() : () -> ()
    %cst_20 = arith.constant dense<0xFF800000> : vector<1x8xf32>
    %44 = vector.multi_reduction <maximumf>, %43, %cst_20 [2] : vector<1x8x8xf32> to vector<1x8xf32>
    %45 = vector.shape_cast %44 : vector<1x8xf32> to vector<1x8x1xf32>
    %46 = vector.broadcast %45 : vector<1x8x1xf32> to vector<1x8x8xf32>
    %47 = arith.subf %43, %46 : vector<1x8x8xf32>
    %48 = math.exp %47 : vector<1x8x8xf32>
    %cst_21 = arith.constant dense<0.000000e+00> : vector<1x8xf32>
    %49 = vector.multi_reduction <add>, %48, %cst_21 [2] : vector<1x8x8xf32> to vector<1x8xf32>
    %50 = vector.shape_cast %49 : vector<1x8xf32> to vector<1x8x1xf32>
    %51 = tpu.reciprocal %50 : vector<1x8x1xf32> -> vector<1x8x1xf32>
    %52 = vector.broadcast %51 : vector<1x8x1xf32> to vector<1x8x8xf32>
    %53 = arith.mulf %48, %52 : vector<1x8x8xf32>
    %54 = arith.truncf %53 : vector<1x8x8xf32> to vector<1x8x8xbf16>
    %55 = vector.extract_strided_slice %40 {offsets = [0, 0, 0], sizes = [1, 8, 8], strides = [1, 1, 1]} : vector<1x8x32xbf16> to vector<1x8x8xbf16>
    "tpu.trace_start"() <{level = 10 : i32, message = "bts,bsd->btd"}> : () -> ()
    %cst_22 = arith.constant dense<0.000000e+00> : vector<1x8x8xf32>
    %56 = tpu.matmul %54, %55, %cst_22 {dimension_numbers = #tpu.dot_dimension_numbers<[2], [1], [1], [2], [0, 0, 0, 1, 1, 2], [0], [0]>} : vector<1x8x8xbf16>, vector<1x8x8xbf16>, vector<1x8x8xf32> -> vector<1x8x8xf32>
    "tpu.trace_stop"() : () -> ()
    %57 = arith.truncf %56 : vector<1x8x8xf32> to vector<1x8x8xbf16>
    %58 = vector.extract_strided_slice %36 {offsets = [0, 0, 8], sizes = [1, 8, 8], strides = [1, 1, 1]} : vector<1x8x32xbf16> to vector<1x8x8xbf16>
    %59 = vector.extract_strided_slice %38 {offsets = [0, 0, 8], sizes = [1, 8, 8], strides = [1, 1, 1]} : vector<1x8x32xbf16> to vector<1x8x8xbf16>
    "tpu.trace_start"() <{level = 10 : i32, message = "btd,bsd->bts"}> : () -> ()
    %cst_23 = arith.constant dense<0.000000e+00> : vector<1x8x8xf32>
    %60 = tpu.matmul %58, %59, %cst_23 {dimension_numbers = #tpu.dot_dimension_numbers<[2], [2], [1], [1], [0, 0, 0, 1, 1, 1], [0], [0]>} : vector<1x8x8xbf16>, vector<1x8x8xbf16>, vector<1x8x8xf32> -> vector<1x8x8xf32>
    "tpu.trace_stop"() : () -> ()
    %cst_24 = arith.constant dense<0xFF800000> : vector<1x8xf32>
    %61 = vector.multi_reduction <maximumf>, %60, %cst_24 [2] : vector<1x8x8xf32> to vector<1x8xf32>
    %62 = vector.shape_cast %61 : vector<1x8xf32> to vector<1x8x1xf32>
    %63 = vector.broadcast %62 : vector<1x8x1xf32> to vector<1x8x8xf32>
    %64 = arith.subf %60, %63 : vector<1x8x8xf32>
    %65 = math.exp %64 : vector<1x8x8xf32>
    %cst_25 = arith.constant dense<0.000000e+00> : vector<1x8xf32>
    %66 = vector.multi_reduction <add>, %65, %cst_25 [2] : vector<1x8x8xf32> to vector<1x8xf32>
    %67 = vector.shape_cast %66 : vector<1x8xf32> to vector<1x8x1xf32>
    %68 = tpu.reciprocal %67 : vector<1x8x1xf32> -> vector<1x8x1xf32>
    %69 = vector.broadcast %68 : vector<1x8x1xf32> to vector<1x8x8xf32>
    %70 = arith.mulf %65, %69 : vector<1x8x8xf32>
    %71 = arith.truncf %70 : vector<1x8x8xf32> to vector<1x8x8xbf16>
    %72 = vector.extract_strided_slice %40 {offsets = [0, 0, 8], sizes = [1, 8, 8], strides = [1, 1, 1]} : vector<1x8x32xbf16> to vector<1x8x8xbf16>
    "tpu.trace_start"() <{level = 10 : i32, message = "bts,bsd->btd"}> : () -> ()
    %cst_26 = arith.constant dense<0.000000e+00> : vector<1x8x8xf32>
    %73 = tpu.matmul %71, %72, %cst_26 {dimension_numbers = #tpu.dot_dimension_numbers<[2], [1], [1], [2], [0, 0, 0, 1, 1, 2], [0], [0]>} : vector<1x8x8xbf16>, vector<1x8x8xbf16>, vector<1x8x8xf32> -> vector<1x8x8xf32>
    "tpu.trace_stop"() : () -> ()
    %74 = arith.truncf %73 : vector<1x8x8xf32> to vector<1x8x8xbf16>
    %75 = vector.extract_strided_slice %36 {offsets = [0, 0, 16], sizes = [1, 8, 8], strides = [1, 1, 1]} : vector<1x8x32xbf16> to vector<1x8x8xbf16>
    %76 = vector.extract_strided_slice %38 {offsets = [0, 0, 16], sizes = [1, 8, 8], strides = [1, 1, 1]} : vector<1x8x32xbf16> to vector<1x8x8xbf16>
    "tpu.trace_start"() <{level = 10 : i32, message = "btd,bsd->bts"}> : () -> ()
    %cst_27 = arith.constant dense<0.000000e+00> : vector<1x8x8xf32>
    %77 = tpu.matmul %75, %76, %cst_27 {dimension_numbers = #tpu.dot_dimension_numbers<[2], [2], [1], [1], [0, 0, 0, 1, 1, 1], [0], [0]>} : vector<1x8x8xbf16>, vector<1x8x8xbf16>, vector<1x8x8xf32> -> vector<1x8x8xf32>
    "tpu.trace_stop"() : () -> ()
    %cst_28 = arith.constant dense<0xFF800000> : vector<1x8xf32>
    %78 = vector.multi_reduction <maximumf>, %77, %cst_28 [2] : vector<1x8x8xf32> to vector<1x8xf32>
    %79 = vector.shape_cast %78 : vector<1x8xf32> to vector<1x8x1xf32>
    %80 = vector.broadcast %79 : vector<1x8x1xf32> to vector<1x8x8xf32>
    %81 = arith.subf %77, %80 : vector<1x8x8xf32>
    %82 = math.exp %81 : vector<1x8x8xf32>
    %cst_29 = arith.constant dense<0.000000e+00> : vector<1x8xf32>
    %83 = vector.multi_reduction <add>, %82, %cst_29 [2] : vector<1x8x8xf32> to vector<1x8xf32>
    %84 = vector.shape_cast %83 : vector<1x8xf32> to vector<1x8x1xf32>
    %85 = tpu.reciprocal %84 : vector<1x8x1xf32> -> vector<1x8x1xf32>
    %86 = vector.broadcast %85 : vector<1x8x1xf32> to vector<1x8x8xf32>
    %87 = arith.mulf %82, %86 : vector<1x8x8xf32>
    %88 = arith.truncf %87 : vector<1x8x8xf32> to vector<1x8x8xbf16>
    %89 = vector.extract_strided_slice %40 {offsets = [0, 0, 16], sizes = [1, 8, 8], strides = [1, 1, 1]} : vector<1x8x32xbf16> to vector<1x8x8xbf16>
    "tpu.trace_start"() <{level = 10 : i32, message = "bts,bsd->btd"}> : () -> ()
    %cst_30 = arith.constant dense<0.000000e+00> : vector<1x8x8xf32>
    %90 = tpu.matmul %88, %89, %cst_30 {dimension_numbers = #tpu.dot_dimension_numbers<[2], [1], [1], [2], [0, 0, 0, 1, 1, 2], [0], [0]>} : vector<1x8x8xbf16>, vector<1x8x8xbf16>, vector<1x8x8xf32> -> vector<1x8x8xf32>
    "tpu.trace_stop"() : () -> ()
    %91 = arith.truncf %90 : vector<1x8x8xf32> to vector<1x8x8xbf16>
    %92 = vector.extract_strided_slice %36 {offsets = [0, 0, 24], sizes = [1, 8, 8], strides = [1, 1, 1]} : vector<1x8x32xbf16> to vector<1x8x8xbf16>
    %93 = vector.extract_strided_slice %38 {offsets = [0, 0, 24], sizes = [1, 8, 8], strides = [1, 1, 1]} : vector<1x8x32xbf16> to vector<1x8x8xbf16>
    "tpu.trace_start"() <{level = 10 : i32, message = "btd,bsd->bts"}> : () -> ()
    %cst_31 = arith.constant dense<0.000000e+00> : vector<1x8x8xf32>
    %94 = tpu.matmul %92, %93, %cst_31 {dimension_numbers = #tpu.dot_dimension_numbers<[2], [2], [1], [1], [0, 0, 0, 1, 1, 1], [0], [0]>} : vector<1x8x8xbf16>, vector<1x8x8xbf16>, vector<1x8x8xf32> -> vector<1x8x8xf32>
    "tpu.trace_stop"() : () -> ()
    %cst_32 = arith.constant dense<0xFF800000> : vector<1x8xf32>
    %95 = vector.multi_reduction <maximumf>, %94, %cst_32 [2] : vector<1x8x8xf32> to vector<1x8xf32>
    %96 = vector.shape_cast %95 : vector<1x8xf32> to vector<1x8x1xf32>
    %97 = vector.broadcast %96 : vector<1x8x1xf32> to vector<1x8x8xf32>
    %98 = arith.subf %94, %97 : vector<1x8x8xf32>
    %99 = math.exp %98 : vector<1x8x8xf32>
    %cst_33 = arith.constant dense<0.000000e+00> : vector<1x8xf32>
    %100 = vector.multi_reduction <add>, %99, %cst_33 [2] : vector<1x8x8xf32> to vector<1x8xf32>
    %101 = vector.shape_cast %100 : vector<1x8xf32> to vector<1x8x1xf32>
    %102 = tpu.reciprocal %101 : vector<1x8x1xf32> -> vector<1x8x1xf32>
    %103 = vector.broadcast %102 : vector<1x8x1xf32> to vector<1x8x8xf32>
    %104 = arith.mulf %99, %103 : vector<1x8x8xf32>
    %105 = arith.truncf %104 : vector<1x8x8xf32> to vector<1x8x8xbf16>
    %106 = vector.extract_strided_slice %40 {offsets = [0, 0, 24], sizes = [1, 8, 8], strides = [1, 1, 1]} : vector<1x8x32xbf16> to vector<1x8x8xbf16>
    "tpu.trace_start"() <{level = 10 : i32, message = "bts,bsd->btd"}> : () -> ()
    %cst_34 = arith.constant dense<0.000000e+00> : vector<1x8x8xf32>
    %107 = tpu.matmul %105, %106, %cst_34 {dimension_numbers = #tpu.dot_dimension_numbers<[2], [1], [1], [2], [0, 0, 0, 1, 1, 2], [0], [0]>} : vector<1x8x8xbf16>, vector<1x8x8xbf16>, vector<1x8x8xf32> -> vector<1x8x8xf32>
    "tpu.trace_stop"() : () -> ()
    %108 = arith.truncf %107 : vector<1x8x8xf32> to vector<1x8x8xbf16>
    %109 = tpu.concatenate %57, %74, %91, %108 in 2 : vector<1x8x8xbf16>, vector<1x8x8xbf16>, vector<1x8x8xbf16>, vector<1x8x8xbf16> -> vector<1x8x32xbf16>
    %110 = vector.shape_cast %109 : vector<1x8x32xbf16> to vector<8x32xbf16>
    %c0_35 = arith.constant 0 : index
    %c0_36 = arith.constant 0 : index
    %111 = vector.load %arg15[%c0_35, %c0_36] : memref<8x32xbf16, #tpu.memory_space<vmem>>, vector<8x32xbf16>
    tpu.vector_store %arg15[%c0_35, %c0_36], %110 {strides = array<i32>} : memref<8x32xbf16, #tpu.memory_space<vmem>>, vector<8x32xbf16>,
    %c0_37 = arith.constant 0 : index
    %c0_38 = arith.constant 0 : index
    %112 = vector.load %arg15[%c0_37, %c0_38] : memref<8x32xbf16, #tpu.memory_space<vmem>>, vector<8x32xbf16>
    %c0_39 = arith.constant 0 : index
    %c0_40 = arith.constant 0 : index
    %113 = vector.load %arg5[%c0_39, %c0_40] : memref<32x32xbf16, #tpu.memory_space<vmem>>, vector<32x32xbf16>
    %cst_41 = arith.constant dense<0.000000e+00> : vector<8x32xf32>
    %114 = tpu.matmul %112, %113, %cst_41 {dimension_numbers = #tpu.dot_dimension_numbers<[1], [0], [0], [1], [0, 0, 1, 1], [], []>} : vector<8x32xbf16>, vector<32x32xbf16>, vector<8x32xf32> -> vector<8x32xf32>
    %c0_42 = arith.constant 0 : index
    %c0_43 = arith.constant 0 : index
    %115 = vector.load %arg6[%c0_42, %c0_43] : memref<1x32xf32, #tpu.memory_space<vmem>>, vector<1x32xf32>
    %116 = vector.shape_cast %115 : vector<1x32xf32> to vector<32xf32>
    %117 = vector.shape_cast %116 : vector<32xf32> to vector<1x32xf32>
    %118 = vector.broadcast %117 : vector<1x32xf32> to vector<8x32xf32>
    %119 = arith.addf %114, %118 : vector<8x32xf32>
    %120 = arith.addf %1, %119 : vector<8x32xf32>
    %cst_44 = arith.constant dense<0.000000e+00> : vector<8xf32>
    %121 = vector.multi_reduction <add>, %120, %cst_44 [1] : vector<8x32xf32> to vector<8xf32>
    %122 = vector.shape_cast %121 : vector<8xf32> to vector<8x1xf32>
    %cst_45 = arith.constant 3.200000e+01 : f32
    %123 = vector.broadcast %cst_45 : f32 to vector<8x1xf32>
    %124 = arith.divf %122, %123 : vector<8x1xf32>
    %125 = vector.broadcast %124 : vector<8x1xf32> to vector<8x32xf32>
    %126 = arith.subf %120, %125 : vector<8x32xf32>
    %127 = arith.mulf %126, %126 : vector<8x32xf32>
    %cst_46 = arith.constant dense<0.000000e+00> : vector<8xf32>
    %128 = vector.multi_reduction <add>, %127, %cst_46 [1] : vector<8x32xf32> to vector<8xf32>
    %129 = vector.shape_cast %128 : vector<8xf32> to vector<8x1xf32>
    %cst_47 = arith.constant 3.200000e+01 : f32
    %130 = vector.broadcast %cst_47 : f32 to vector<8x1xf32>
    %131 = arith.divf %129, %130 : vector<8x1xf32>
    %132 = vector.broadcast %124 : vector<8x1xf32> to vector<8x32xf32>
    %133 = arith.subf %120, %132 : vector<8x32xf32>
    %cst_48 = arith.constant 9.99999974E-6 : f32
    %134 = vector.broadcast %cst_48 : f32 to vector<8x1xf32>
    %135 = arith.addf %131, %134 : vector<8x1xf32>
    %136 = math.rsqrt %135 : vector<8x1xf32>
    %137 = vector.broadcast %136 : vector<8x1xf32> to vector<8x32xf32>
    %138 = arith.mulf %133, %137 : vector<8x32xf32>
    %c0_49 = arith.constant 0 : index
    %c0_50 = arith.constant 0 : index
    %139 = vector.load %arg7[%c0_49, %c0_50] : memref<1x32xf32, #tpu.memory_space<vmem>>, vector<1x32xf32>
    %140 = vector.shape_cast %139 : vector<1x32xf32> to vector<32xf32>
    %141 = vector.shape_cast %140 : vector<32xf32> to vector<1x32xf32>
    %142 = vector.broadcast %141 : vector<1x32xf32> to vector<8x32xf32>
    %143 = arith.mulf %138, %142 : vector<8x32xf32>
    %c0_51 = arith.constant 0 : index
    %c0_52 = arith.constant 0 : index
    %144 = vector.load %arg8[%c0_51, %c0_52] : memref<1x32xf32, #tpu.memory_space<vmem>>, vector<1x32xf32>
    %145 = vector.shape_cast %144 : vector<1x32xf32> to vector<32xf32>
    %146 = vector.shape_cast %145 : vector<32xf32> to vector<1x32xf32>
    %147 = vector.broadcast %146 : vector<1x32xf32> to vector<8x32xf32>
    %148 = arith.addf %143, %147 : vector<8x32xf32>
    %149 = arith.truncf %148 : vector<8x32xf32> to vector<8x32xbf16>
    %c0_53 = arith.constant 0 : index
    %c0_54 = arith.constant 0 : index
    %150 = vector.load %arg9[%c0_53, %c0_54] : memref<32x128xbf16, #tpu.memory_space<vmem>>, vector<32x128xbf16>
    %cst_55 = arith.constant dense<0.000000e+00> : vector<8x128xf32>
    %151 = tpu.matmul %149, %150, %cst_55 {dimension_numbers = #tpu.dot_dimension_numbers<[1], [0], [0], [1], [0, 0, 1, 1], [], []>} : vector<8x32xbf16>, vector<32x128xbf16>, vector<8x128xf32> -> vector<8x128xf32>
    %c0_56 = arith.constant 0 : index
    %c0_57 = arith.constant 0 : index
    %152 = vector.load %arg10[%c0_56, %c0_57] : memref<1x128xf32, #tpu.memory_space<vmem>>, vector<1x128xf32>
    %153 = vector.shape_cast %152 : vector<1x128xf32> to vector<128xf32>
    %154 = vector.shape_cast %153 : vector<128xf32> to vector<1x128xf32>
    %155 = vector.broadcast %154 : vector<1x128xf32> to vector<8x128xf32>
    %156 = arith.addf %151, %155 : vector<8x128xf32>
    %cst_58 = arith.constant 0.000000e+00 : f32
    %157 = vector.broadcast %cst_58 : f32 to vector<8x128xf32>
    %158 = arith.maximumf %156, %157 : vector<8x128xf32>
    %159 = arith.truncf %158 : vector<8x128xf32> to vector<8x128xbf16>
    %c0_59 = arith.constant 0 : index
    %c0_60 = arith.constant 0 : index
    %160 = vector.load %arg11[%c0_59, %c0_60] : memref<128x32xbf16, #tpu.memory_space<vmem>>, vector<128x32xbf16>
    %cst_61 = arith.constant dense<0.000000e+00> : vector<8x32xf32>
    %161 = tpu.matmul %159, %160, %cst_61 {dimension_numbers = #tpu.dot_dimension_numbers<[1], [0], [0], [1], [0, 0, 1, 1], [], []>} : vector<8x128xbf16>, vector<128x32xbf16>, vector<8x32xf32> -> vector<8x32xf32>
    %c0_62 = arith.constant 0 : index
    %c0_63 = arith.constant 0 : index
    %162 = vector.load %arg12[%c0_62, %c0_63] : memref<1x32xf32, #tpu.memory_space<vmem>>, vector<1x32xf32>
    %163 = vector.shape_cast %162 : vector<1x32xf32> to vector<32xf32>
    %164 = vector.shape_cast %163 : vector<32xf32> to vector<1x32xf32>
    %165 = vector.broadcast %164 : vector<1x32xf32> to vector<8x32xf32>
    %166 = arith.addf %161, %165 : vector<8x32xf32>
    %167 = arith.addf %120, %166 : vector<8x32xf32>
    %168 = vector.shape_cast %167 : vector<8x32xf32> to vector<1x8x32xf32>
    %c0_64 = arith.constant 0 : index
    %c0_65 = arith.constant 0 : index
    %c0_66 = arith.constant 0 : index
    %169 = vector.load %arg13[%c0_64, %c0_65, %c0_66] : memref<1x8x32xf32, #tpu.memory_space<vmem>>, vector<1x8x32xf32>
    tpu.vector_store %arg13[%c0_64, %c0_65, %c0_66], %168 {strides = array<i32>} : memref<1x8x32xf32, #tpu.memory_space<vmem>>, vector<1x8x32xf32>,
    return
  }
  func.func @transform_0(%arg0: i32) -> (i32, i32, i32) {
    %c0_i32 = arith.constant 0 : i32
    %c0_i32_0 = arith.constant 0 : i32
    %c0_i32_1 = arith.constant 0 : i32
    return %arg0, %c0_i32, %c0_i32_0 : i32, i32, i32
  }
  func.func @transform_1(%arg0: i32) -> (i32, i32) {
    %c0_i32 = arith.constant 0 : i32
    %c0_i32_0 = arith.constant 0 : i32
    %c0_i32_1 = arith.constant 0 : i32
    return %c0_i32, %c0_i32_0 : i32, i32
  }
  func.func @transform_2(%arg0: i32) -> (i32, i32) {
    %c0_i32 = arith.constant 0 : i32
    %c0_i32_0 = arith.constant 0 : i32
    %c0_i32_1 = arith.constant 0 : i32
    return %c0_i32, %c0_i32_0 : i32, i32
  }
  func.func @transform_3(%arg0: i32) -> (i32, i32) {
    %c0_i32 = arith.constant 0 : i32
    %c0_i32_0 = arith.constant 0 : i32
    %c0_i32_1 = arith.constant 0 : i32
    return %c0_i32, %c0_i32_0 : i32, i32
  }
  func.func @transform_4(%arg0: i32) -> (i32, i32) {
    %c0_i32 = arith.constant 0 : i32
    %c0_i32_0 = arith.constant 0 : i32
    %c0_i32_1 = arith.constant 0 : i32
    return %c0_i32, %c0_i32_0 : i32, i32
  }
  func.func @transform_5(%arg0: i32) -> (i32, i32) {
    %c0_i32 = arith.constant 0 : i32
    %c0_i32_0 = arith.constant 0 : i32
    %c0_i32_1 = arith.constant 0 : i32
    return %c0_i32, %c0_i32_0 : i32, i32
  }
  func.func @transform_6(%arg0: i32) -> (i32, i32) {
    %c0_i32 = arith.constant 0 : i32
    %c0_i32_0 = arith.constant 0 : i32
    %c0_i32_1 = arith.constant 0 : i32
    return %c0_i32, %c0_i32_0 : i32, i32
  }
  func.func @transform_7(%arg0: i32) -> (i32, i32) {
    %c0_i32 = arith.constant 0 : i32
    %c0_i32_0 = arith.constant 0 : i32
    %c0_i32_1 = arith.constant 0 : i32
    return %c0_i32, %c0_i32_0 : i32, i32
  }
  func.func @transform_8(%arg0: i32) -> (i32, i32) {
    %c0_i32 = arith.constant 0 : i32
    %c0_i32_0 = arith.constant 0 : i32
    %c0_i32_1 = arith.constant 0 : i32
    return %c0_i32, %c0_i32_0 : i32, i32
  }
  func.func @transform_9(%arg0: i32) -> (i32, i32) {
    %c0_i32 = arith.constant 0 : i32
    %c0_i32_0 = arith.constant 0 : i32
    %c0_i32_1 = arith.constant 0 : i32
    return %c0_i32, %c0_i32_0 : i32, i32
  }
  func.func @transform_10(%arg0: i32) -> (i32, i32) {
    %c0_i32 = arith.constant 0 : i32
    %c0_i32_0 = arith.constant 0 : i32
    %c0_i32_1 = arith.constant 0 : i32
    return %c0_i32, %c0_i32_0 : i32, i32
  }
  func.func @transform_11(%arg0: i32) -> (i32, i32) {
    %c0_i32 = arith.constant 0 : i32
    %c0_i32_0 = arith.constant 0 : i32
    %c0_i32_1 = arith.constant 0 : i32
    return %c0_i32, %c0_i32_0 : i32, i32
  }
  func.func @transform_12(%arg0: i32) -> (i32, i32, i32) {
    %c0_i32 = arith.constant 0 : i32
    %c0_i32_0 = arith.constant 0 : i32
    %c0_i32_1 = arith.constant 0 : i32
    return %arg0, %c0_i32, %c0_i32_0 : i32, i32, i32
  }
}

</mosaic_0001>

<bundles_post_ra>
// kernel: _lambda_.1
= control target key start
LH: loop header
LB: loop body
LE: loop exit
PB: predicated region body
PF: predicated region fallthrough
CT: control target
= control target key end

     0   :  { %s1612_s0 = inlined_call_operand.vmem [shape: f32[2,8,32], index: 0, kind: input, shape index: {}]   ;;  %s1613_s1 = inlined_call_operand.vmem [shape: f32[1,32], index: 1, kind: input, shape index: {}]   ;;  %s1614_s2 = inlined_call_operand.vmem [shape: f32[1,32], index: 2, kind: input, shape index: {}]   ;;  %s1615_s3 = inlined_call_operand.vmem [shape: bf16[32,96], index: 3, kind: input, shape index: {}]   ;;  %s1616_s4 = inlined_call_operand.vmem [shape: bf16[32,32], index: 4, kind: input, shape index: {}]   ;;  %s1617_s5 = inlined_call_operand.vmem [shape: f32[1,32], index: 5, kind: input, shape index: {}]   ;;  %s1618_s6 = inlined_call_operand.vmem [shape: f32[1,32], index: 6, kind: input, shape index: {}]   ;;  %s1619_s7 = inlined_call_operand.vmem [shape: f32[1,32], index: 7, kind: input, shape index: {}]   ;;  %s1620_s8 = inlined_call_operand.vmem [shape: bf16[32,128], index: 8, kind: input, shape index: {}]   ;;  %s1621_s9 = inlined_call_operand.vmem [shape: f32[1,128], index: 9, kind: input, shape index: {}]   ;;  %s1622_s10 = inlined_call_operand.vmem [shape: bf16[128,32], index: 10, kind: input, shape index: {}]   ;;  %s1623_s11 = inlined_call_operand.vmem [shape: f32[1,32], index: 11, kind: input, shape index: {}]   ;;  %s1624_s12 = inlined_call_operand.hbm [shape: f32[2,8,32], index: 12, kind: output, shape index: {}]  }
   0x1   :  { %1625 = sst [smem:[#allocation7_spill]] %s1612_s0 }
   0x2   :  { %1626 = sst [smem:[#allocation8_spill]] %s1613_s1 }
   0x3   :  { %1627 = sst [smem:[#allocation9_spill]] %s1614_s2 }
   0x4   :  { %17 = vsyncpa [#allocation5], 0 }
   0x5   :  { %19 = vsyncpa [#allocation5 + $0x1], 0  ;;  %s1383_s21 = smov 0   ;;  %s1385_s22 = smov 0  }
   0x6   :  { %s1387_s23 = smov 0   ;;  %s1389_s24 = smov 0  }
   0x7 LB: > { %s1404_s25 = sadd.s32 4294967295, %s1301_s24   ;;  %s1065_s26 = sadd.s32 4294967294, %s1301_s24   ;;  %s1301_s24 = sphi %s1389_s24, %s1636_s24   ;;  %s1297_s23 = sphi %s1387_s23, %s1635_s23   ;;  %s1293_s22 = sphi %s1385_s22, %s1634_s22   ;;  %s1289_s21 = sphi %s1383_s21, %s1633_s21  }
   0x8   : > { %s1408_s27 = sadd.s32 1, %s1301_s24   ;;  %s289_s28 = sadd.s32 1, %s1297_s23 }
   0x9   : > { %s286_s29 = ssub.s32 %s1301_s24, %s1408_s27  ;;  %p299_p0 = scmp.ne.s32.totalorder %s1297_s23, %s1293_s22 }
   0xa   : > { %p287_p1 = scmp.eq.s32.totalorder %s286_s29, 0  ;;  %p300_p2 = scmp.eq.s32.totalorder %s1404_s25, 1 }
   0xb   : > { %p305_p3 = scmp.ne.s32.totalorder %s1293_s22, %s1289_s21  ;;  %p306_p4 = scmp.eq.s32.totalorder %s1065_s26, 1 }
   0xc   : > { %s1419_s30 = scalar_select %p287_p1, %s1297_s23, %s289_s28  }
   0xd   : > { %p1421_p5 = por %p300_p2, %p299_p0  ;;  %p1425_p6 = por %p306_p4, %p305_p3 }
   0xe   : > { %p1068_p7 = scmp.ge.s32.totalorder %s1301_s24, 1  ;;  %p364_p8 = scmp.lt.s32.totalorder %s1301_s24, 3 }
  0x10   : > { %p365_p9 = pnand %p1068_p7, %p364_p8 }
  0x11   : > { %p405_p10 = scmp.lt.s32.totalorder (!%p365_p9), %s1404_s25, 1  ;;  %s1630_s0 = sld [smem:[#allocation7_spill]] (!%p365_p9) }
  0x12   : > { %368 = sbr.rel (%p365_p9) target bundleno = 2433 (0x981), region = 68  ;;  %s1631_s1 = sld [smem:[#allocation8_spill]] (!%p365_p9) }
  0x13   : > { %s1632_s2 = sld [smem:[#allocation9_spill]] (!%p365_p9)  ;;  %s1305_s20 = smov (!%p365_p9), 64  }
  0x14   : > { %s1306_s26 = smov (!%p365_p9), 96   ;;  %s1307_s28 = smov (!%p365_p9), 72  }
  0x15   : > { %s1308_s29 = smov (!%p365_p9), 80   ;;  %s1311_s17 = smov (!%p365_p9), 112  }
  0x16   : > { %s1312_s18 = smov (!%p365_p9), 40  }
  0x17   : > { %s406_s15 = scalar_select %p405_p10, %s1404_s25, 1  ;;  %vm411_vm0 = vcmask 261120   ;;  %v1303_v2 = vmov 32.0   ;;  %v1143_v14 = vld [vmem:[%s1615_s3 + $0x8] sm:$0xff]  ;;  %v1142_v15 = vld [vmem:[%s1615_s3] sm:$0xff]  ;;  %vm485_vm5 = vcmask 781312  }
  0x18   : > { %1217 = vrcp.f32 %v1303_v2  ;;  %477 = vmatpush.bf16.msra.mxu0 %v1143_v14  ;;  %v1210_v25 = vld [vmem:[%s1631_s1] ss:$0 sm:$0xff]  ;;  %vm543_vm6 = vcmask 1043456   ;;  %vm493_vm7 = vcmask 64512  }
  0x19   : > { %s1070_s16 = sshll.u32 %s406_s15, 3  ;;  %v1211_v28 = vld [vmem:[%s1632_s2] ss:$0 sm:$0xff]  ;;  %s1309_s15 = smov 120  }
  0x1a   : > { %s408_s19 = scalar_lea.vmem %s1630_s0, %s1070_s16  ;;  %s1310_s16 = smov 104  }
  0x1b   : > { %v1436_v0 = vld [vmem:[%s408_s19] sm:$0xff]  ;;  %s1304_s19 = smov 88  }
  0x1c   : > { %v412_v1 = vsel %vm411_vm0, %v1436_v0, 0.0  ;;  %478 = vmatpush.bf16.msra.mxu0 %v1142_v15 }
  0x1d   : > { %413 = vadd.xlane.f32.xlu0 %v412_v1 }
  0x1e   : > { %v1218_v3 = vpop.eup %1217 }
  0x1f   : > { %v416_v4 = vmul.f32 32.0, %v1218_v3  ;;  %vm420_vm1 = vweird.f32 %v1218_v3 }
  0x21   : > { %v417_v5 = vsub.f32 1.0, %v416_v4 }
  0x23   : > { %v418_v6 = vmul.f32 %v1218_v3, %v417_v5 }
  0x25   : > { %v419_v7 = vadd.f32 %v1218_v3, %v418_v6 }
  0x27   : > { %v1440_v8 = vsel %vm420_vm1, %v1218_v3, %v419_v7 }
  0x90   : > { %v414_v9 = vpop.xlane.xlu0 %413 }
  0x91   : > { %v422_v10 = vmul.f32 %v1440_v8, %v414_v9 }
  0x93   : > { %v423_v11 = vsub.f32 %v1436_v0, %v422_v10 }
  0x95   : > { %v424_v12 = vmul.f32 %v423_v11, %v423_v11 }
  0x97   : > { %v425_v13 = vsel %vm411_vm0, %v424_v12, 0.0 }
  0x98   : > { %426 = vadd.xlane.f32.xlu0 %v425_v13 }
 0x10b   : > { %v427_v16 = vpop.xlane.xlu0 %426 }
 0x10c   : > { %v428_v17 = vmul.f32 %v427_v16, %v1440_v8 }
 0x10e   : > { %v429_v18 = vadd.f32 1e-05, %v428_v17 }
 0x110   : > { %1219 = vrsqrt.f32 %v429_v18  ;;  %vm436_vm3 = vweird.f32 %v429_v18 }
 0x116   : > { %v1220_v19 = vpop.eup %1219 }
 0x117   : > { %v431_v20 = vmul.f32 %v1220_v19, %v429_v18  ;;  %vm437_vm2 = vweird.f32 %v1220_v19 }
 0x118   : > { %vm438_vm4 = vmor %vm436_vm3, %vm437_vm2 }
 0x119   : > { %v432_v21 = vmul.f32 %v1220_v19, %v431_v20 }
 0x11b   : > { %v433_v22 = vmul.f32 0.5, %v432_v21 }
 0x11d   : > { %v434_v23 = vsub.f32 1.5, %v433_v22 }
 0x11f   : > { %v435_v24 = vmul.f32 %v1220_v19, %v434_v23 }
 0x121   : > { %v439_v26 = vsel %vm438_vm4, %v1220_v19, %v435_v24 }
 0x122   : > { %v440_v27 = vmul.f32 %v439_v26, %v423_v11 }
 0x124   : > { %v445_v29 = vmul.f32 %v1210_v25, %v440_v27 }
 0x126   : > { %v450_v30 = vadd.f32 %v1211_v28, %v445_v29 }
 0x128   : > { %v451_v31 = vpack.c.bf16 %v450_v30, %v450_v30 }
 0x12a   : > { %1079 = vmatmul.msk.bf16.vlgmr.msra.gmra.mxu0 %vm411_vm0, %v451_v31 }
 0x1a7   : > { %v480_v32 = vpop.f32.mrf.mxu0 }
 0x1a8   : > { %v484_v33 = vpack.c.bf16 %v480_v32, %v480_v32 }
 0x1aa   : > { %486 = vst.msk [vmem:[#allocation2] sm:$0xf] %vm485_vm5, %v484_v33 }
 0x1af   : > { %v482_v34 = vpop.f32.mrf.mxu0 }
 0x1b1   : > { %v487_v35 = vld [vmem:[#allocation2] sm:$0xf] }
 0x1b2   : > { %v489_v36 = vunpack.c.l.b16 %v487_v35 }
 0x1b4   : > { %v1459_v37 = vpack.c.b16 %v489_v36, %v489_v36 }
 0x1b6   : > { %563 = vrot.lane.b32.xlu0 %v1459_v37, %s1304_s19  ;;  %538 = vrot.lane.b32.xlu2 %v1459_v37, %s1305_s20  ;;  %s1313_s19 = smov 56   ;;  %s1314_s20 = smov 48  }
 0x1b7   : > { %491 = vrot.lane.b32.xlu1 %v1459_v37, %s1306_s26  ;;  %s1315_s26 = smov 8  }
 0x1be   : > { %703 = vrot.lane.b32.xlu0 %v1459_v37, %s1307_s28  ;;  %s1316_s28 = smov 16  }
 0x1c6   : > { %633 = vrot.lane.b32.xlu0 %v1459_v37, %s1308_s29  ;;  %s1317_s29 = smov 24  }
 0x210   : > { %v539_v38 = vpop.permute.xlu2 %538 }
 0x211   : > { %v545_v39 = vsel %vm543_vm6, %v539_v38, 0 }
 0x212   : > { %554 = vmatpush.bf16.msra.mxu2 %v545_v39 }
 0x228   : > { %v564_v40 = vpop.permute.xlu0 %563 }
 0x229   : > { %v492_v41 = vpop.permute.xlu1 %491  ;;  %v569_v42 = vsel %vm493_vm7, %v564_v40, 0 }
 0x22a   : > { %v498_v43 = vsel %vm493_vm7, %v492_v41, 0  ;;  %578 = vmatpush.bf16.xpose.msrb.mxu2 %v569_v42 }
 0x22b   : > { %507 = vmatpush.bf16.xpose.msra.mxu1 %v498_v43 }
 0x230   : > { %v704_v44 = vpop.permute.xlu0 %703 }
 0x231   : > { %v709_v45 = vsel %vm493_vm7, %v704_v44, 0 }
 0x232   : > { %1080 = vmatmul.msk.bf16.vlgmr.msra.gmra.mxu1 %vm493_vm7, %v487_v35  ;;  %718 = vmatpush.bf16.xpose.msra.mxu3 %v709_v45 }
 0x238   : > { %v634_v46 = vpop.permute.xlu0 %633 }
 0x239   : > { %v639_v47 = vsel %vm493_vm7, %v634_v46, 0 }
 0x23a   : > { %648 = vmatpush.bf16.xpose.msrb.mxu0 %v639_v47 }
 0x2af   : > { %v509_v48 = vpop.f32.mrf.mxu1 }
 0x2b0   : > { %v513_v49 = vsel %vm493_vm7, %v509_v48, -inf }
 0x2b1   : > { %514 = vmax.xlane.f32.xlu1 %v513_v49 }
 0x2b7   : > { %v511_v50 = vpop.f32.mrf.mxu1 }
 0x324   : > { %v515_v51 = vpop.xlane.xlu1 %514 }
 0x325   : > { %v516_v52 = vsub.f32 %v509_v48, %v515_v51 }
 0x327   : > { %v517_v53 = vmul.f32 1.442695, %v516_v52 }
 0x329   : > { %1221 = vpow2.f32 %v517_v53 }
 0x32f   : > { %v1222_v54 = vpop.eup %1221 }
 0x330   : > { %v519_v55 = vsel %vm493_vm7, %v1222_v54, 0.0 }
 0x331   : > { %520 = vadd.xlane.f32.xlu2 %v519_v55 }
 0x349   : > { %561 = vrot.lane.b32.xlu2 %v1459_v37, %s1309_s15 }
 0x351   : > { %701 = vrot.lane.b32.xlu2 %v1459_v37, %s1310_s16 }
 0x359   : > { %631 = vrot.lane.b32.xlu2 %v1459_v37, %s1311_s17 }
 0x3a4   : > { %v521_v56 = vpop.xlane.xlu2 %520 }
 0x3a5   : > { %1223 = vrcp.f32 %v521_v56  ;;  %v533_v61 = vand.u32 2147483648, %v521_v56  ;;  %v531_v63 = vand.u32 2147483647, %v521_v56  ;;  %vm527_vm9 = vweird.f32 %v521_v56 }
 0x3a7   : > { %v534_v2 = vor.u32 1.1754944e-38, %v533_v61  ;;  %vm532_vm11 = vcmp.eq.f32.partialorder %v531_v63, 8.507059e+37 }
 0x3ab   : > { %v1224_v57 = vpop.eup %1223 }
 0x3ac   : > { %v523_v58 = vmul.f32 %v1224_v57, %v521_v56  ;;  %v562_v59 = vpop.permute.xlu2 %561  ;;  %vm528_vm8 = vweird.f32 %v1224_v57 }
 0x3ad   : > { %vm529_vm10 = vmor %vm527_vm9, %vm528_vm8 }
 0x3ae   : > { %v524_v60 = vsub.f32 1.0, %v523_v58 }
 0x3b0   : > { %v525_v62 = vmul.f32 %v1224_v57, %v524_v60 }
 0x3b2   : > { %v526_v1 = vadd.f32 %v1224_v57, %v525_v62 }
 0x3b4   : > { %v702_v3 = vpop.permute.xlu2 %701  ;;  %v530_v4 = vsel %vm529_vm10, %v1224_v57, %v526_v1 }
 0x3b5   : > { %1086 = vmatmul.msk.bf16.vlgmr.msra.gmra.mxu3 %vm493_vm7, %v702_v3  ;;  %v535_v5 = vsel %vm532_vm11, %v534_v2, %v530_v4  ;;  %vm792_vm11 = vcmask 195584  }
 0x3b6   : > { %v536_v6 = vmul.f32 %v1222_v54, %v535_v5 }
 0x3b8   : > { %v537_v7 = vpack.c.bf16 %v536_v6, %v536_v6 }
 0x3ba   : > { %1081 = vmatmul.msk.bf16.vlgmr.msra.gmra.mxu2 %vm493_vm7, %v537_v7 }
 0x3bc   : > { %v632_v9 = vpop.permute.xlu2 %631 }
 0x3bd   : > { %1084 = vmatmul.msk.bf16.vlgmr.msrb.gmra.mxu0 %vm493_vm7, %v632_v9 }
 0x3ca   : > { %1082 = vmatmul.msk.bf16.vlgmr.msrb.gmra.mxu2 %vm493_vm7, %v562_v59 }
 0x438   : > { %v720_v10 = vpop.f32.mrf.mxu3 }
 0x439   : > { %v724_v11 = vsel %vm493_vm7, %v720_v10, -inf }
 0x43a   : > { %725 = vmax.xlane.f32.xlu0 %v724_v11  ;;  %v650_v12 = vpop.f32.mrf.mxu0 }
 0x43b   : > { %v654_v13 = vsel %vm493_vm7, %v650_v12, -inf }
 0x43c   : > { %655 = vmax.xlane.f32.xlu2 %v654_v13 }
 0x43d   : > { %v1483_v14 = vpop.f32.mrf.mxu2 }
 0x440   : > { %v722_v15 = vpop.f32.mrf.mxu3 }
 0x442   : > { %v652_v16 = vpop.f32.mrf.mxu0 }
 0x445   : > { %v558_v17 = vpop.f32.mrf.mxu2 }
 0x44d   : > { %v580_v18 = vpop.f32.mrf.mxu2 }
 0x44e   : > { %v584_v30 = vsel %vm493_vm7, %v580_v18, -inf }
 0x454   : > { %749 = vrot.lane.b32.xlu2 %v1459_v37, %s1312_s18 }
 0x455   : > { %v582_v19 = vpop.f32.mrf.mxu2 }
 0x4ad   : > { %v726_v20 = vpop.xlane.xlu0 %725 }
 0x4ae   : > { %v727_v21 = vsub.f32 %v720_v10, %v726_v20 }
 0x4af   : > { %v656_v22 = vpop.xlane.xlu2 %655 }
 0x4b0   : > { %v728_v23 = vmul.f32 1.442695, %v727_v21  ;;  %v657_v24 = vsub.f32 %v650_v12, %v656_v22 }
 0x4b2   : > { %1225 = vpow2.f32 %v728_v23  ;;  %v658_v25 = vmul.f32 1.442695, %v657_v24 }
 0x4b4   : > { %1227 = vpow2.f32 %v658_v25 }
 0x4b7   : > { %v750_v38 = vpop.permute.xlu2 %749 }
 0x4b8   : > { %v1486_v26 = vpop.eup %1225  ;;  %v755_v41 = vsel %vm543_vm6, %v750_v38, 0 }
 0x4b9   : > { %v730_v27 = vsel %vm493_vm7, %v1486_v26, 0.0 }
 0x4ba   : > { %v1490_v28 = vpop.eup %1227  ;;  %731 = vadd.xlane.f32.xlu1 %v730_v27 }
 0x4bb   : > { %v660_v29 = vsel %vm493_vm7, %v1490_v28, 0.0 }
 0x4bc   : > { %661 = vadd.xlane.f32.xlu0 %v660_v29 }
 0x4c2   : > { %585 = vmax.xlane.f32.xlu1 %v584_v30 }
 0x4db   : > { %609 = vrot.lane.b32.xlu1 %v1459_v37, %s1313_s19 }
 0x52d   : > { %v1496_v31 = vpop.xlane.xlu1 %731 }
 0x52e   : > { %v744_v7 = vand.u32 2147483648, %v1496_v31  ;;  %vm738_vm8 = vweird.f32 %v1496_v31  ;;  %v742_v10 = vand.u32 2147483647, %v1496_v31 }
 0x52f   : > { %v662_v42 = vpop.xlane.xlu0 %661 }
 0x530   : > { %v674_v57 = vand.u32 2147483648, %v662_v42  ;;  %vm668_vm15 = vweird.f32 %v662_v42  ;;  %v672_v59 = vand.u32 2147483647, %v662_v42  ;;  %v745_v15 = vor.u32 1.1754944e-38, %v744_v7  ;;  %v1213_v7 = vld [vmem:[%s1618_s6] ss:$0 sm:$0xff] }
 0x531   : > { %vm743_vm10 = vcmp.eq.f32.partialorder %v742_v10, 8.507059e+37 }
 0x532   : > { %v675_v2 = vor.u32 1.1754944e-38, %v674_v57  ;;  %vm673_vm4 = vcmp.eq.f32.partialorder %v672_v59, 8.507059e+37  ;;  %v1154_v59 = vld [vmem:[%s1622_s10 + $0x30] sm:$0xff] }
 0x535   : > { %v586_v32 = vpop.xlane.xlu1 %585 }
 0x536   : > { %v587_v33 = vsub.f32 %v580_v18, %v586_v32 }
 0x538   : > { %v588_v34 = vmul.f32 1.442695, %v587_v33 }
 0x53a   : > { %1229 = vpow2.f32 %v588_v34 }
 0x53b   : > { %1231 = vrcp.f32 %v662_v42 }
 0x53c   : > { %1233 = vrcp.f32 %v1496_v31 }
 0x540   : > { %v1230_v35 = vpop.eup %1229 }
 0x541   : > { %v590_v36 = vsel %vm493_vm7, %v1230_v35, 0.0  ;;  %v1232_v43 = vpop.eup %1231 }
 0x542   : > { %591 = vadd.xlane.f32.xlu1 %v590_v36  ;;  %v664_v45 = vmul.f32 %v1232_v43, %v662_v42  ;;  %v1234_v47 = vpop.eup %1233  ;;  %vm669_vm13 = vweird.f32 %v1232_v43  ;;  %v1144_v36 = vld [vmem:[%s1616_s4] sm:$0xff] }
 0x543   : > { %v734_v51 = vmul.f32 %v1234_v47, %v1496_v31  ;;  %vm670_vm2 = vmor %vm668_vm15, %vm669_vm13  ;;  %vm739_vm5 = vweird.f32 %v1234_v47 }
 0x544   : > { %v665_v46 = vsub.f32 1.0, %v664_v45  ;;  %vm740_vm9 = vmor %vm738_vm8, %vm739_vm5 }
 0x545   : > { %v735_v56 = vsub.f32 1.0, %v734_v51 }
 0x546   : > { %v666_v50 = vmul.f32 %v1232_v43, %v665_v46  ;;  %v1212_v46 = vld [vmem:[%s1617_s5] ss:$0 sm:$0xff] }
 0x547   : > { %v736_v1 = vmul.f32 %v1234_v47, %v735_v56  ;;  %v1155_v56 = vld [vmem:[%s1622_s10 + $0x38] sm:$0xff] }
 0x548   : > { %v667_v55 = vadd.f32 %v1232_v43, %v666_v50  ;;  %975 = vmatpush.bf16.msrb.mxu3 %v1155_v56 }
 0x549   : > { %v737_v6 = vadd.f32 %v1234_v47, %v736_v1 }
 0x54a   : > { %v671_v63 = vsel %vm670_vm2, %v1232_v43, %v667_v55  ;;  %v1147_v55 = vld [vmem:[%s1620_s8 + $0x8] sm:$0xff] }
 0x54b   : > { %v676_v5 = vsel %vm673_vm4, %v675_v2, %v671_v63  ;;  %v741_v13 = vsel %vm740_vm9, %v1234_v47, %v737_v6 }
 0x54c   : > { %v677_v9 = vmul.f32 %v1490_v28, %v676_v5  ;;  %v746_v17 = vsel %vm743_vm10, %v745_v15, %v741_v13  ;;  %976 = vmatpush.bf16.msrb.mxu3 %v1154_v59 }
 0x54d   : > { %v610_v39 = vpop.permute.xlu1 %609  ;;  %v747_v18 = vmul.f32 %v1486_v26, %v746_v17  ;;  %v1148_v17 = vld [vmem:[%s1622_s10] sm:$0xff] }
 0x54e   : > { %v615_v40 = vsel %vm543_vm6, %v610_v39, 0  ;;  %v678_v16 = vpack.c.bf16 %v677_v9, %v677_v9 }
 0x54f   : > { %624 = vmatpush.bf16.msra.mxu2 %v615_v40  ;;  %v748_v19 = vpack.c.bf16 %v747_v18, %v747_v18  ;;  %v560_v40 = vpack.c.bf16 %v1483_v14, %v1483_v14  ;;  %v1215_v18 = vld [vmem:[%s1621_s9] ss:$0 sm:$0xff] }
 0x553   : > { %764 = vmatpush.bf16.msrb.mxu2 %v755_v41 }
 0x55b   : > { %679 = vrot.lane.b32.xlu1 %v1459_v37, %s1314_s20  ;;  %s402_s20 = sand.u32 1, %s1293_s22  }
 0x5b5   : > { %v592_v44 = vpop.xlane.xlu1 %591 }
 0x5b6   : > { %1235 = vrcp.f32 %v592_v44  ;;  %v604_v53 = vand.u32 2147483648, %v592_v44  ;;  %v602_v37 = vand.u32 2147483647, %v592_v44  ;;  %vm598_vm14 = vweird.f32 %v592_v44 }
 0x5b8   : > { %v605_v60 = vor.u32 1.1754944e-38, %v604_v53  ;;  %vm603_vm3 = vcmp.eq.f32.partialorder %v602_v37, 8.507059e+37 }
 0x5bc   : > { %v1236_v48 = vpop.eup %1235 }
 0x5bd   : > { %v594_v49 = vmul.f32 %v1236_v48, %v592_v44  ;;  %vm599_vm12 = vweird.f32 %v1236_v48 }
 0x5be   : > { %vm600_vm1 = vmor %vm598_vm14, %vm599_vm12  ;;  %vm796_vm12 = vcmask 257024  }
 0x5bf   : > { %v595_v52 = vsub.f32 1.0, %v594_v49 }
 0x5c1   : > { %v596_v54 = vmul.f32 %v1236_v48, %v595_v52 }
 0x5c3   : > { %v597_v58 = vadd.f32 %v1236_v48, %v596_v54 }
 0x5c5   : > { %v601_v61 = vsel %vm600_vm1, %v1236_v48, %v597_v58 }
 0x5c6   : > { %v606_v62 = vsel %vm603_vm3, %v605_v60, %v601_v61  ;;  %v1153_v61 = vld [vmem:[%s1622_s10 + $0x28] sm:$0xff] }
 0x5c7   : > { %v607_v3 = vmul.f32 %v1230_v35, %v606_v62  ;;  %v1145_v35 = vld [vmem:[%s1616_s4 + $0x8] sm:$0xff]  ;;  %977 = vmatpush.bf16.msrb.mxu3 %v1153_v61  ;;  %v1152_v62 = vld [vmem:[%s1622_s10 + $0x20] sm:$0xff] }
 0x5c8   : > { %828 = vmatpush.bf16.msra.mxu0 %v1145_v35 }
 0x5c9   : > { %v608_v4 = vpack.c.bf16 %v607_v3, %v607_v3 }
 0x5cb   : > { %1083 = vmatmul.msk.bf16.vlgmr.msra.gmra.mxu2 %vm493_vm7, %v608_v4  ;;  %978 = vmatpush.bf16.msrb.mxu3 %v1152_v62  ;;  %v1150_v4 = vld [vmem:[%s1622_s10 + $0x10] sm:$0xff] }
 0x5cc   : > { %829 = vmatpush.bf16.msra.mxu0 %v1144_v36 }
 0x5cd   : > { %v680_v11 = vpop.permute.xlu1 %679 }
 0x5ce   : > { %v685_v12 = vsel %vm543_vm6, %v680_v11, 0  ;;  %vm789_vm6 = vcmask 130048   ;;  %v1214_v11 = vld [vmem:[%s1619_s7] ss:$0 sm:$0xff] }
 0x5cf   : > { %694 = vmatpush.bf16.msrb.mxu1 %v685_v12 }
 0x5d2   : > { %1085 = vmatmul.msk.bf16.vlgmr.msrb.gmra.mxu1 %vm493_vm7, %v678_v16  ;;  %v1149_v16 = vld [vmem:[%s1622_s10 + $0x8] sm:$0xff] }
 0x5d3   : > { %898 = vmatpush.bf16.msra.mxu1 %v1147_v55 }
 0x5db   : > { %1087 = vmatmul.msk.bf16.vlgmr.msrb.gmra.mxu2 %vm493_vm7, %v748_v19 }
 0x64e   : > { %v626_v20 = vpop.f32.mrf.mxu2 }
 0x64f   : > { %v630_v21 = vpack.c.bf16 %v626_v20, %v626_v20  ;;  %v696_v22 = vpop.f32.mrf.mxu1 }
 0x650   : > { %v700_v23 = vpack.c.bf16 %v696_v22, %v696_v22 }
 0x651   : > { %v772_v24 = vunpack.c.l.b16 %v630_v21 }
 0x652   : > { %v777_v25 = vunpack.c.l.b16 %v700_v23 }
 0x653   : > { %v773_v27 = vpack.c.b16 %v772_v24, %v772_v24  ;;  %v1216_v24 = vld [vmem:[%s1623_s11] ss:$0 sm:$0xff] }
 0x654   : > { %v778_v28 = vpack.c.b16 %v777_v25, %v777_v25 }
 0x655   : > { %774 = vrot.lane.b32.xlu0 %v773_v27, %s1315_s26  ;;  %s1069_s26 = sshll.u32 %s402_s20, 3 }
 0x656   : > { %v628_v29 = vpop.f32.mrf.mxu2  ;;  %779 = vrot.lane.b32.xlu1 %v778_v28, %s1316_s28  ;;  %s1139_s28 = sshll.u32 %s1404_s25, 3  ;;  %s404_s18 = scalar_lea.vmem [#allocation4], %s1069_s26 }
 0x657   : > { %v698_v30 = vpop.f32.mrf.mxu1  ;;  %s1001_s0 = scalar_lea.hbm %s1624_s12, %s1139_s28  ;;  %s1003_s19 = sshll.u32 %s404_s18, 4  ;;  %s1004_s19 = int_to_ptr.vmem [resolvable:$true] %s1003_s19 }
 0x658   : > { %s1005_s1 = sshll.u32 %s1001_s0, 4  ;;  %s991_s25 = scalar_lea.sflag [#allocation5], %s402_s20  ;;  %s1006_s1 = int_to_ptr.hbm [resolvable:$true] %s1005_s1 }
 0x659   : > { %s1253_s2 = sshra.s32 %s1006_s1, 4  ;;  %s1259_s26 = scalar_lea.hbm %s1624_s12, 16  ;;  %s1254_s2 = int_to_ptr.hbm [resolvable:$true] %s1253_s2 }
 0x65a   : > { %p1260_p0 = scmp.lt.s32.totalorder %s1254_s2, %s1624_s12 }
 0x65e   : > { %v766_v31 = vpop.f32.mrf.mxu2 }
 0x65f   : > { %v770_v32 = vpack.c.bf16 %v766_v31, %v766_v31 }
 0x661   : > { %v782_v26 = vunpack.c.l.b16 %v770_v32 }
 0x663   : > { %v783_v33 = vpack.c.b16 %v782_v26, %v782_v26 }
 0x665   : > { %784 = vrot.lane.b32.xlu1 %v783_v33, %s1317_s29  ;;  %s1255_s29 = scalar_lea.hbm %s1254_s2, 8 }
 0x666   : > { %v768_v34 = vpop.f32.mrf.mxu2  ;;  %p1256_p11 = scmp.ne.s32.totalorder %s1254_s2, %s1255_s29  ;;  %p1261_p1 = scmp.lt.s32.totalorder %s1259_s26, %s1255_s29 }
 0x668   : > { %p1257_p12 = pnand %p1256_p11, %p1421_p5  ;;  %p1262_p2 = por %p1261_p1, %p1260_p0 }
 0x66a   : > { %p1258_p13 = pneg %p1257_p12 }
 0x66c   : > { %p1263_p3 = pnand %p1262_p2, %p1258_p13 }
 0x6c7   : > { %v775_v39 = vpop.permute.xlu0 %774 }
 0x6c8   : > { %v780_v38 = vpop.permute.xlu1 %779  ;;  %v788_v41 = vsel %vm493_vm7, %v560_v40, %v775_v39 }
 0x6c9   : > { %v791_v42 = vsel %vm789_vm6, %v788_v41, %v780_v38 }
 0x6d7   : > { %v785_v43 = vpop.permute.xlu1 %784 }
 0x6d8   : > { %v794_v44 = vsel %vm792_vm11, %v791_v42, %v785_v43 }
 0x6d9   : > { %797 = vst.msk [vmem:[#allocation3] sm:$0xf] %vm796_vm12, %v794_v44 }
 0x6e0   : > { %v798_v45 = vld [vmem:[#allocation3] sm:$0xf] }
 0x6e1   : > { %1096 = vmatmul.msk.bf16.vlgmr.msra.gmra.mxu0 %vm411_vm0, %v798_v45 }
 0x75e   : > { %v831_v47 = vpop.f32.mrf.mxu0 }
 0x75f   : > { %v832_v48 = vadd.f32 %v1212_v46, %v831_v47 }
 0x761   : > { %v1527_v14 = vadd.f32 %v832_v48, %v1436_v0  ;;  %v1146_v0 = vld [vmem:[%s1620_s8] sm:$0xff] }
 0x762   : > { %899 = vmatpush.bf16.msra.mxu1 %v1146_v0 }
 0x763   : > { %v836_v49 = vsel %vm411_vm0, %v1527_v14, 0.0 }
 0x764   : > { %837 = vadd.xlane.f32.xlu2 %v836_v49 }
 0x766   : > { %v833_v50 = vpop.f32.mrf.mxu0 }
 0x7d7   : > { %v838_v51 = vpop.xlane.xlu2 %837 }
 0x7d8   : > { %v839_v52 = vmul.f32 %v838_v51, %v1440_v8 }
 0x7da   : > { %v840_v53 = vsub.f32 %v1527_v14, %v839_v52 }
 0x7dc   : > { %v841_v54 = vmul.f32 %v840_v53, %v840_v53 }
 0x7de   : > { %v842_v37 = vsel %vm411_vm0, %v841_v54, 0.0 }
 0x7df   : > { %843 = vadd.xlane.f32.xlu0 %v842_v37 }
 0x852   : > { %v844_v57 = vpop.xlane.xlu0 %843 }
 0x853   : > { %v845_v58 = vmul.f32 %v844_v57, %v1440_v8  ;;  %v1151_v8 = vld [vmem:[%s1622_s10 + $0x18] sm:$0xff] }
 0x854   : > { %979 = vmatpush.bf16.msrb.mxu3 %v1151_v8 }
 0x855   : > { %v846_v60 = vadd.f32 1e-05, %v845_v58 }
 0x857   : > { %1237 = vrsqrt.f32 %v846_v60  ;;  %vm853_vm13 = vweird.f32 %v846_v60 }
 0x858   : > { %980 = vmatpush.bf16.msrb.mxu3 %v1150_v4 }
 0x85c   : > { %981 = vmatpush.bf16.msrb.mxu3 %v1149_v16 }
 0x85d   : > { %v1238_v63 = vpop.eup %1237 }
 0x85e   : > { %v848_v1 = vmul.f32 %v1238_v63, %v846_v60  ;;  %vm854_vm7 = vweird.f32 %v1238_v63 }
 0x85f   : > { %vm855_vm14 = vmor %vm853_vm13, %vm854_vm7 }
 0x860   : > { %v849_v2 = vmul.f32 %v1238_v63, %v848_v1  ;;  %982 = vmatpush.bf16.msrb.mxu3 %v1148_v17 }
 0x862   : > { %v850_v3 = vmul.f32 0.5, %v849_v2 }
 0x864   : > { %v851_v5 = vsub.f32 1.5, %v850_v3 }
 0x866   : > { %v852_v6 = vmul.f32 %v1238_v63, %v851_v5 }
 0x868   : > { %v856_v9 = vsel %vm855_vm14, %v1238_v63, %v852_v6 }
 0x869   : > { %v857_v10 = vmul.f32 %v856_v9, %v840_v53 }
 0x86b   : > { %v862_v12 = vmul.f32 %v1213_v7, %v857_v10 }
 0x86d   : > { %v867_v13 = vadd.f32 %v1214_v11, %v862_v12 }
 0x86f   : > { %v868_v15 = vpack.c.bf16 %v867_v13, %v867_v13 }
 0x871   : > { %1105 = vmatmul.msk.bf16.vlgmr.msra.gmra.mxu1 %vm411_vm0, %v868_v15 }
 0x8ee   : > { %v901_v19 = vpop.f32.mrf.mxu1 }
 0x8ef   : > { %v902_v20 = vadd.f32 %v1215_v18, %v901_v19 }
 0x8f1   : > { %v905_v21 = vmax.f32 %v902_v20, 0.0 }
 0x8f3   : > { %v906_v22 = vpack.c.bf16 %v905_v21, %v905_v21 }
 0x8f5   : > { %983 = vmatmul.bf16.vlgmr.msrb.gmra.mxu3 %v906_v22 }
 0x8f6   : > { %v903_v23 = vpop.f32.mrf.mxu1 }
 0x978   : > { %v984_v25 = vpop.f32.mrf.mxu3 }
 0x979   : > { %v985_v27 = vadd.f32 %v1216_v24, %v984_v25 }
 0x97b   : > { %v988_v28 = vadd.f32 %v985_v27, %v1527_v14 }
 0x97d   : > { %989 = vst.msk [vmem:[%s404_s18] sm:$0xff] %vm411_vm0, %v988_v28 }
 0x97e   : > { %1266 = shalt.err (!%p1263_p3)
}
 0x97f   : > { %1156 = dma.vmem_to_hbm [thread:$0]  (%p1421_p5), %s1004_s19, 128, %s1006_s1, %s991_s25  }
 0x980   : > { %v986_v29 = vpop.f32.mrf.mxu3 }
 0x981 PF: > { %p1162_p4 = scmp.ge.s32.totalorder %s1301_s24, 2  ;;  %s1017_s20 = sand.u32 1, %s1289_s21  }
 0x982   : > { %s1018_s17 = scalar_lea.sflag [#allocation5], %s1017_s20 }
 0x983   : > { %p1159_p7 = pnand %p1162_p4, %p1425_p6 }
 0x985   : > { %p1160_p8 = pneg %p1159_p7 }
 0x987   : > { %1284 = dma.done.wait (%p1160_p8), %s1018_s17, 128  }
 0x988   : > { %1286 = vsyncadd (%p1160_p8), %s1018_s17, 4294967168  ;;  %p22_p9 = scmp.ge.s32.totalorder %s1408_s27, 4   ;;  %s1633_s21 = smov %s1293_s22 }
 0x989   : > { %s1634_s22 = smov %s1297_s23  ;;  %s1635_s23 = smov %s1419_s30 }
 0x98a   : > { %s1636_s24 = smov %s1408_s27  ;;  %24 = sbr.rel (!%p22_p9) target bundleno = 7 (0x7), region = 103 }
 0x98f   :  { %1024 = vsyncpa [#allocation5], 1 }
 0x990   :  { %1026 = vsyncpa [#allocation5 + $0x1], 1 }

</bundles_post_ra>
